<compile_context>
chip_gen: v7x
topology: tpu7x:2x2x1
jax: 0.10.0
libtpu: 0.0.40
codegen_flags: <defaults>
</compile_context>

<pallas_src>
import jax
import jax.numpy as jnp
from jax.experimental import pallas as pl
from jax.experimental.pallas import tpu as pltpu

# ----------------------- scaled-down model dimensions -----------------------
B = 2                  # batch
IMG_C, IMG_HW = 3, 64  # input image (NCHW), 64x64
PATCH = 16             # ViT/MAE patch size
GRID_HW = IMG_HW // PATCH          # 4  -> spatial size of the (B,h,w,C) outputs
N_PATCH = GRID_HW * GRID_HW        # 16 patch tokens
N_TOK = N_PATCH + 1                # +1 CLS token
P_DIM = IMG_C * PATCH * PATCH      # 768 flattened patch dim
D = 128                # embed dim   (scaled down from 768)
HEADS = 4              # num heads   (scaled down from 12)
DFF = 4 * D            # MLP hidden dim
DEPTH = 2              # transformer blocks (scaled down from 12)
LN_EPS = 1e-6          # timm ViT LayerNorm eps


# ------------------------------ Pallas kernels ------------------------------
def _patch_embed_kernel(p_ref, w_ref, b_ref, pos_ref, o_ref):
    # Non-overlapping PatchEmbed conv == one matmul; fuse bias + pos-embed add.
    x = p_ref[0].astype(jnp.float32)                         # (N_PATCH, P_DIM)
    y = jnp.dot(x, w_ref[...], preferred_element_type=jnp.float32) + b_ref[...]
    o_ref[0] = (y + pos_ref[...]).astype(o_ref.dtype)


def patch_embed(patches, w, b, pos_patch):
    Bn, Np, P = patches.shape
    Dm = w.shape[1]
    return pl.pallas_call(
        _patch_embed_kernel,
        grid=(Bn,),
        in_specs=[pl.BlockSpec((1, Np, P), lambda i: (i, 0, 0)),
                  pl.BlockSpec((P, Dm), lambda i: (0, 0)),
                  pl.BlockSpec((1, Dm), lambda i: (0, 0)),
                  pl.BlockSpec((Np, Dm), lambda i: (0, 0))],
        out_specs=pl.BlockSpec((1, Np, Dm), lambda i: (i, 0, 0)),
        out_shape=jax.ShapeDtypeStruct((Bn, Np, Dm), patches.dtype),
        compiler_params=pltpu.CompilerParams(dimension_semantics=("parallel",)),
    )(patches, w, b, pos_patch)


def _vit_block_kernel(x_ref, mask_ref,
                      g1_ref, b1_ref, wqkv_ref, bqkv_ref, wproj_ref, bproj_ref,
                      g2_ref, b2_ref, w1_ref, bb1_ref, w2_ref, bb2_ref,
                      attn_ref, mlp_ref, out_ref):
    x = x_ref[0].astype(jnp.float32)                          # (N, D)
    n, d = x.shape
    num_heads = mask_ref.shape[0]
    scale = (d // num_heads) ** -0.5

    def layer_norm(v, g_ref, b_ref):
        mu = jnp.mean(v, axis=-1, keepdims=True)
        vc = v - mu
        var = jnp.mean(vc * vc, axis=-1, keepdims=True)
        return (vc * jax.lax.rsqrt(var + LN_EPS)
                * g_ref[...].astype(jnp.float32)
                + b_ref[...].astype(jnp.float32))

    # ---- attention: LN1 -> fused QKV matmul -> per-head masked SDPA -> proj
    h = layer_norm(x, g1_ref, b1_ref)
    qkv = (jnp.dot(h, wqkv_ref[...], preferred_element_type=jnp.float32)
           + bqkv_ref[...])                                   # (N, 3D)
    q = qkv[:, :d] * scale                                    # 128-aligned slices
    k = qkv[:, d:2 * d]
    v = qkv[:, 2 * d:]

    acc = jnp.zeros((n, d), jnp.float32)                      # concat'd head outs
    for hd in range(num_heads):
        m = mask_ref[hd].astype(jnp.float32)                  # (1, D) 0/1 lane mask
        # (q*m) @ k.T sums only this head's lanes -> exact per-head scores.
        s = jax.lax.dot_general(q * m, k, (((1,), (1,)), ((), ())),
                                preferred_element_type=jnp.float32)   # (N, N)
        s = s - jnp.max(s, axis=-1, keepdims=True)
        p = jnp.exp(s)
        p = p * pl.reciprocal(jnp.sum(p, axis=-1, keepdims=True), approx=True)
        acc = acc + jnp.dot(p, v, preferred_element_type=jnp.float32) * m
    attn = (jnp.dot(acc, wproj_ref[...], preferred_element_type=jnp.float32)
            + bproj_ref[...])                                 # (N, D)
    attn_ref[0] = attn.astype(attn_ref.dtype)                 # saved_attn_node (ls1=Identity)

    x1 = x + attn

    # ---- MLP: LN2 -> fc1 -> GELU -> fc2
    h2 = layer_norm(x1, g2_ref, b2_ref)
    h2 = (jnp.dot(h2, w1_ref[...], preferred_element_type=jnp.float32)
          + bb1_ref[...])                                     # (N, DFF)
    # TODO(synk): timm's Mlp uses exact (erf) GELU; tanh approximation kept here
    # for Mosaic-safe lowering.
    h2 = jax.nn.gelu(h2, approximate=True)
    mlp = (jnp.dot(h2, w2_ref[...], preferred_element_type=jnp.float32)
           + bb2_ref[...])                                    # (N, D)
    mlp_ref[0] = mlp.astype(mlp_ref.dtype)                    # saved_mlp_node (ls2=Identity)
    out_ref[0] = (x1 + mlp).astype(out_ref.dtype)             # saved_block_output


def vit_block(x, head_mask, blk):
    Bn, N, Dm = x.shape

    def vec(nlanes):
        return pl.BlockSpec((1, nlanes), lambda b: (0, 0))

    in_specs = [
        pl.BlockSpec((1, N, Dm), lambda b: (b, 0, 0)),         # x (per-batch tile)
        pl.BlockSpec(head_mask.shape, lambda b: (0, 0, 0)),    # per-head lane masks
        vec(Dm), vec(Dm),                                      # ln1 gamma / beta
        pl.BlockSpec((Dm, 3 * Dm), lambda b: (0, 0)),          # fused qkv weight
        vec(3 * Dm),                                           # qkv bias
        pl.BlockSpec((Dm, Dm), lambda b: (0, 0)),              # out-proj weight
        vec(Dm),                                               # out-proj bias
        vec(Dm), vec(Dm),                                      # ln2 gamma / beta
        pl.BlockSpec((Dm, DFF), lambda b: (0, 0)),             # mlp fc1 weight
        vec(DFF),                                              # mlp fc1 bias
        pl.BlockSpec((DFF, Dm), lambda b: (0, 0)),             # mlp fc2 weight
        vec(Dm),                                               # mlp fc2 bias
    ]
    tok_spec = pl.BlockSpec((1, N, Dm), lambda b: (b, 0, 0))
    tok_shape = jax.ShapeDtypeStruct((Bn, N, Dm), x.dtype)
    attn_node, mlp_node, block_out = pl.pallas_call(
        _vit_block_kernel,
        grid=(Bn,),
        in_specs=in_specs,
        out_specs=(tok_spec, tok_spec, tok_spec),
        out_shape=(tok_shape, tok_shape, tok_shape),
        compiler_params=pltpu.CompilerParams(dimension_semantics=("parallel",)),
    )(x, head_mask,
      blk['ln1_g'], blk['ln1_b'], blk['wqkv'], blk['bqkv'],
      blk['wproj'], blk['bproj'], blk['ln2_g'], blk['ln2_b'],
      blk['w1'], blk['b1'], blk['w2'], blk['b2'])
    return attn_node, mlp_node, block_out


# --------------------------------- glue --------------------------------------
def patchify(image_nchw):
    # Non-overlapping 16x16 patch extraction (== PatchEmbed conv input layout).
    x = jnp.transpose(image_nchw, (0, 2, 3, 1))               # NHWC
    Bn, H, W, Cn = x.shape
    gh, gw = H // PATCH, W // PATCH
    x = x.reshape(Bn, gh, PATCH, gw, PATCH, Cn)
    x = x.transpose(0, 1, 3, 2, 4, 5)                         # (B, gh, gw, ph, pw, C)
    return x.reshape(Bn, gh * gw, PATCH * PATCH * Cn)


def remove_cls_and_reshape(tokens):
    Bn, _, Dm = tokens.shape
    return tokens[:, 1:].reshape(Bn, GRID_HW, GRID_HW, Dm)


def make_head_mask(num_heads, d):
    dh = d // num_heads
    head_of_lane = jnp.arange(d) // dh
    mask = (head_of_lane[None, :] == jnp.arange(num_heads)[:, None])
    return mask.astype(jnp.float32).reshape(num_heads, 1, d)


def init_params(key):
    # TODO(synk): pretrained MAE checkpoint (torch.hub) has no Pallas
    # equivalent; deterministic random weights are used instead.
    keys = jax.random.split(key, 4 + DEPTH)

    def w(k, shape, scale=0.02):
        return jax.random.normal(k, shape, jnp.float32) * scale

    params = {
        'patch_w': w(keys[0], (P_DIM, D)),
        'patch_b': w(keys[1], (1, D)),
        'cls': w(keys[2], (1, D)),
        # TODO(synk): the module resamples a pretrained pos_embed with nearest
        # interpolation; here pos_embed is created directly at the target size.
        'pos': w(keys[3], (N_TOK, D)),
        'blocks': [],
    }
    for i in range(DEPTH):
        bk = jax.random.split(keys[4 + i], 8)
        params['blocks'].append({
            'ln1_g': jnp.ones((1, D), jnp.float32),
            'ln1_b': jnp.zeros((1, D), jnp.float32),
            'wqkv': w(bk[0], (D, 3 * D)), 'bqkv': w(bk[1], (1, 3 * D)),
            'wproj': w(bk[2], (D, D)), 'bproj': w(bk[3], (1, D)),
            'ln2_g': jnp.ones((1, D), jnp.float32),
            'ln2_b': jnp.zeros((1, D), jnp.float32),
            'w1': w(bk[4], (D, DFF)), 'b1': w(bk[5], (1, DFF)),
            'w2': w(bk[6], (DFF, D)), 'b2': w(bk[7], (1, D)),
        })
    return params


def forward(params, image):
    # --- patch embed + pos embed (fused kernel), then prepend CLS token ---
    patches = patchify(image)                                  # (B, N_PATCH, P_DIM)
    tok = patch_embed(patches, params['patch_w'], params['patch_b'],
                      params['pos'][1:])                       # (B, N_PATCH, D)
    cls_tok = (params['cls'] + params['pos'][0:1]).reshape(1, 1, D)
    x = jnp.concatenate(
        [jnp.broadcast_to(cls_tok, (tok.shape[0], 1, D)).astype(tok.dtype), tok],
        axis=1)                                                # (B, N_TOK, D)

    head_mask = make_head_mask(HEADS, D)

    # --- transformer blocks; each saves attn / mlp / block outputs ---
    attn_outs, mlp_outs, block_outs = [], [], []
    for blk in params['blocks']:
        attn_node, mlp_node, x = vit_block(x, head_mask, blk)
        attn_outs.append(remove_cls_and_reshape(attn_node))
        mlp_outs.append(remove_cls_and_reshape(mlp_node))
        block_outs.append(remove_cls_and_reshape(x))

    # TODO(synk): the encoder's final LayerNorm + classification head are not
    # reproduced — the module discards mae_encoder.forward's return value and
    # only uses the per-block saved tensors returned here.
    return {'attn': attn_outs, 'mlp': mlp_outs, 'block': block_outs}


if __name__ == "__main__":
    key = jax.random.PRNGKey(0)
    k_img, k_params = jax.random.split(key)

    image = jax.random.normal(k_img, (B, IMG_C, IMG_HW, IMG_HW), jnp.float32)  # NCHW
    params = init_params(k_params)

    out = jax.block_until_ready(forward(params, image))

    # mirror the module's output contract: lists (one per block) of (B,h,w,C), h==w
    for name in ('attn', 'mlp', 'block'):
        vals = out[name]
        assert len(vals) == DEPTH, (name, len(vals))
        for a in vals:
            assert a.ndim == 4 and a.shape[0] == B and a.shape[1] == a.shape[2], \
                (name, a.shape)

    print("KERNEL_OK")
</pallas_src>

<mosaic_0001>
module attributes {stable_mosaic.version = 11 : i64} {
  func.func @_patch_embed_kernel(%arg0: i32, %arg1: memref<1x16x768xf32, #tpu.memory_space<vmem>>, %arg2: memref<768x128xf32, #tpu.memory_space<vmem>>, %arg3: memref<1x128xf32, #tpu.memory_space<vmem>>, %arg4: memref<16x128xf32, #tpu.memory_space<vmem>>, %arg5: memref<1x16x128xf32, #tpu.memory_space<vmem>>) attributes {dimension_semantics = [#tpu.dimension_semantics<parallel>], iteration_bounds = array<i64: 2>, scalar_prefetch = 0 : i64, scratch_operands = 0 : i64, tpu.core_type = #tpu.core_type<tc>, window_params = [{transform_indices = @transform_0, window_bounds = array<i64: 1, 16, 768>}, {pipeline_mode = #tpu.pipeline_mode<synchronous>, transform_indices = @transform_1, window_bounds = array<i64: 768, 128>}, {pipeline_mode = #tpu.pipeline_mode<synchronous>, transform_indices = @transform_2, window_bounds = array<i64: 1, 128>}, {pipeline_mode = #tpu.pipeline_mode<synchronous>, transform_indices = @transform_3, window_bounds = array<i64: 16, 128>}, {transform_indices = @transform_4, window_bounds = array<i64: 1, 16, 128>}]} {
    %c0 = arith.constant 0 : index
    %c0_0 = arith.constant 0 : index
    %c0_1 = arith.constant 0 : index
    %0 = vector.load %arg1[%c0, %c0_0, %c0_1] : memref<1x16x768xf32, #tpu.memory_space<vmem>>, vector<1x16x768xf32>
    %1 = vector.shape_cast %0 : vector<1x16x768xf32> to vector<16x768xf32>
    %c0_2 = arith.constant 0 : index
    %c0_3 = arith.constant 0 : index
    %2 = vector.load %arg2[%c0_2, %c0_3] : memref<768x128xf32, #tpu.memory_space<vmem>>, vector<768x128xf32>
    %cst = arith.constant dense<0.000000e+00> : vector<16x128xf32>
    %3 = tpu.matmul %1, %2, %cst {dimension_numbers = #tpu.dot_dimension_numbers<[1], [0], [0], [1], [0, 0, 1, 1], [], []>} : vector<16x768xf32>, vector<768x128xf32>, vector<16x128xf32> -> vector<16x128xf32>
    %c0_4 = arith.constant 0 : index
    %c0_5 = arith.constant 0 : index
    %4 = vector.load %arg3[%c0_4, %c0_5] : memref<1x128xf32, #tpu.memory_space<vmem>>, vector<1x128xf32>
    %5 = vector.broadcast %4 : vector<1x128xf32> to vector<16x128xf32>
    %6 = arith.addf %3, %5 : vector<16x128xf32>
    %c0_6 = arith.constant 0 : index
    %c0_7 = arith.constant 0 : index
    %7 = vector.load %arg4[%c0_6, %c0_7] : memref<16x128xf32, #tpu.memory_space<vmem>>, vector<16x128xf32>
    %8 = arith.addf %6, %7 : vector<16x128xf32>
    %c0_8 = arith.constant 0 : index
    %c0_9 = arith.constant 0 : index
    %c0_10 = arith.constant 0 : index
    %9 = vector.load %arg5[%c0_8, %c0_9, %c0_10] : memref<1x16x128xf32, #tpu.memory_space<vmem>>, vector<1x16x128xf32>
    %10 = vector.shape_cast %9 : vector<1x16x128xf32> to vector<16x128xf32>
    %11 = vector.shape_cast %8 : vector<16x128xf32> to vector<1x16x128xf32>
    tpu.vector_store %arg5[%c0_8, %c0_9, %c0_10], %11 {strides = array<i32>} : memref<1x16x128xf32, #tpu.memory_space<vmem>>, vector<1x16x128xf32>,
    return
  }
  func.func @transform_0(%arg0: i32) -> (i32, i32, i32) {
    %c0_i32 = arith.constant 0 : i32
    %c0_i32_0 = arith.constant 0 : i32
    %c0_i32_1 = arith.constant 0 : i32
    return %arg0, %c0_i32, %c0_i32_0 : i32, i32, i32
  }
  func.func @transform_1(%arg0: i32) -> (i32, i32) {
    %c0_i32 = arith.constant 0 : i32
    %c0_i32_0 = arith.constant 0 : i32
    %c0_i32_1 = arith.constant 0 : i32
    return %c0_i32, %c0_i32_0 : i32, i32
  }
  func.func @transform_2(%arg0: i32) -> (i32, i32) {
    %c0_i32 = arith.constant 0 : i32
    %c0_i32_0 = arith.constant 0 : i32
    %c0_i32_1 = arith.constant 0 : i32
    return %c0_i32, %c0_i32_0 : i32, i32
  }
  func.func @transform_3(%arg0: i32) -> (i32, i32) {
    %c0_i32 = arith.constant 0 : i32
    %c0_i32_0 = arith.constant 0 : i32
    %c0_i32_1 = arith.constant 0 : i32
    return %c0_i32, %c0_i32_0 : i32, i32
  }
  func.func @transform_4(%arg0: i32) -> (i32, i32, i32) {
    %c0_i32 = arith.constant 0 : i32
    %c0_i32_0 = arith.constant 0 : i32
    %c0_i32_1 = arith.constant 0 : i32
    return %arg0, %c0_i32, %c0_i32_0 : i32, i32, i32
  }
}

</mosaic_0001>

<bundles_post_ra>
// kernel: tpu_custom_call.1
= control target key start
LH: loop header
LB: loop body
LE: loop exit
PB: predicated region body
PF: predicated region fallthrough
CT: control target
= control target key end

     0   :  { %9 = vsyncpa [#allocation3], 0  ;;  %s1461_s0 = inlined_call_operand.hbm [shape: f32[2,16,768], index: 0, kind: input, shape index: {}]   ;;  %s1462_s1 = inlined_call_operand.hbm [shape: f32[768,128], index: 1, kind: input, shape index: {}]   ;;  %s1463_s2 = inlined_call_operand.vmem [shape: f32[1,128], index: 2, kind: input, shape index: {}]   ;;  %s1464_s3 = inlined_call_operand.hbm [shape: f32[16,128], index: 3, kind: input, shape index: {}]   ;;  %s1465_s4 = inlined_call_operand.hbm [shape: f32[2,16,128], index: 4, kind: output, shape index: {}]  }
   0x1   :  { %11 = vsyncpa [#allocation3 + $0x1], 0 }
   0x2   :  { %12 = vsyncpa [#allocation6], 0 }
   0x3   :  { %13 = vsyncpa [#allocation4], 0 }
   0x4   :  { %15 = vsyncpa [#allocation4 + $0x1], 0  ;;  %s1209_s15 = smov 0   ;;  %s1211_s16 = smov 0  }
   0x5   :  { %s1213_s17 = smov 0   ;;  %s1215_s18 = smov 0  }
   0x6 LB: > { %s1230_s19 = sadd.s32 4294967295, %s1172_s18   ;;  %s697_s20 = sadd.s32 4294967294, %s1172_s18   ;;  %s1172_s18 = sphi %s1215_s18, %s1485_s18   ;;  %s1168_s17 = sphi %s1213_s17, %s1484_s17   ;;  %s1164_s16 = sphi %s1211_s16, %s1483_s16   ;;  %s1160_s15 = sphi %s1209_s15, %s1482_s15  }
   0x7   : > { %p41_p0 = scmp.ne.s32.totalorder %s1164_s16, %s1160_s15  ;;  %p1466_p1 = scmp.eq.s32.totalorder %s1230_s19, 0 }
   0x8   : > { %p134_p3 = scmp.eq.s32.totalorder %s697_s20, 1  ;;  %p698_p5 = scmp.ge.s32.totalorder %s1172_s18, 1 }
   0x9   : > { %p1239_p4 = por %p1466_p1, %p41_p0  ;;  %p141_p7 = scmp.lt.s32.totalorder %s1172_s18, 3 }
   0xa   : > { %p1244_p6 = por %p134_p3, %p41_p0  ;;  %s1174_s24 = smov [#allocation5]  }
   0xb   : > { %s1469_s21 = scalar_select %p1239_p4, 1, 0 }
   0xc   : > { %s1470_s22 = scalar_select %p1244_p6, 1, 0 }
   0xd   : > { %p1249_p8 = pnand %p698_p5, %p141_p7  ;;  %s153_s25 = sshll.u32 %s1174_s24, 4  ;;  %s1253_s25 = int_to_ptr.vmem [resolvable:$true] %s153_s25 }
   0xe   : > { %s1175_s27 = smov [#allocation7]   ;;  %s1016_s5 = scalar_lea.hbm %s1462_s1, 12288 }
   0xf   : > { %p955_p9 = pneg %p1249_p8  ;;  %s169_s28 = sshll.u32 %s1175_s27, 4  ;;  %s1264_s28 = int_to_ptr.vmem [resolvable:$true] %s169_s28 }
  0x10   : > { %p1017_p12 = scmp.ne.s32.totalorder %s1462_s1, %s1016_s5  ;;  %p1023_p5 = scmp.lt.u32.totalorder %s1016_s5, %s1462_s1 }
  0x11   : > { %p1260_p11 = pnand %p955_p9, %p1466_p1 }
  0x13   : > { %p1018_p13 = pneg %p1260_p11 }
  0x15   : > { %p1019_p0 = pnand %p1018_p13, %p1017_p12 }
  0x17   : > { %p1020_p3 = pneg %p1019_p0 }
  0x19   : > { %p1025_p7 = pnand %p1023_p5, %p1020_p3 }
  0x1b   : > { %1028 = shalt.err (!%p1025_p7)
}
  0x1c   : > { %s1029_s10 = scalar_lea.vmem %s1253_s25, 12288  ;;  %p1037_p2 = scmp.lt.s32.totalorder %s1253_s25, %s1253_s25 }
  0x1d   : > { %p1030_p9 = scmp.ne.s32.totalorder %s1253_s25, %s1029_s10  ;;  %p1038_p12 = scmp.lt.s32.totalorder %s1029_s10, %s1029_s10 }
  0x1f   : > { %p1032_p10 = pnand %p1030_p9, %p1018_p13  ;;  %p1039_p0 = por %p1038_p12, %p1037_p2 }
  0x21   : > { %p1033_p1 = pneg %p1032_p10 }
  0x23   : > { %p1040_p6 = pnand %p1039_p0, %p1033_p1 }
  0x25   : > { %1043 = shalt.err (!%p1040_p6)
}
  0x26   : > { %s1176_s11 = smov 128   ;;  %s1177_s12 = smov 8  }
  0x27   : > { %958 = dma.hbm_to_vmem [thread:$0]  (!%p1260_p11), %s1462_s1, 12288, %s1253_s25, [#allocation6], %s1176_s11, %s1176_s11, %s1177_s12  }
  0x28   : > { %s1044_s27 = scalar_lea.hbm %s1464_s3, 256 }
  0x29   : > { %p1045_p2 = scmp.ne.s32.totalorder %s1464_s3, %s1044_s27  ;;  %p1051_p10 = scmp.lt.u32.totalorder %s1044_s27, %s1464_s3 }
  0x2b   : > { %p1047_p1 = pnand %p1045_p2, %p1018_p13 }
  0x2d   : > { %p1048_p6 = pneg %p1047_p1 }
  0x2f   : > { %p1053_p3 = pnand %p1051_p10, %p1048_p6 }
  0x31   : > { %1056 = shalt.err (!%p1053_p3)
}
  0x32   : > { %s1057_s25 = scalar_lea.vmem %s1264_s28, 256  ;;  %p1065_p12 = scmp.lt.s32.totalorder %s1264_s28, %s1264_s28 }
  0x33   : > { %p1058_p5 = scmp.ne.s32.totalorder %s1264_s28, %s1057_s25  ;;  %p1066_p0 = scmp.lt.s32.totalorder %s1057_s25, %s1057_s25 }
  0x35   : > { %p1060_p7 = pnand %p1058_p5, %p1018_p13  ;;  %p1067_p2 = por %p1066_p0, %p1065_p12 }
  0x37   : > { %p1061_p9 = pneg %p1060_p7 }
  0x39   : > { %p1068_p1 = pnand %p1067_p2, %p1061_p9 }
  0x3b   : > { %1071 = shalt.err (!%p1068_p1)
}
  0x3c   : > { %961 = dma.hbm_to_vmem [thread:$0]  (!%p1260_p11), %s1464_s3, 256, %s1264_s28, [#allocation6], %s1176_s11, %s1176_s11, %s1177_s12  }
  0x3d   : > { %s1319_s9 = sadd.s32 1, %s1172_s18   ;;  %s28_s26 = sadd.s32 1, %s1168_s17 }
  0x3e   : > { %s25_s10 = ssub.s32 %s1172_s18, %s1319_s9  ;;  %p35_p13 = scmp.ne.s32.totalorder %s1168_s17, %s1164_s16 }
  0x3f   : > { %p26_p6 = scmp.eq.s32.totalorder %s25_s10, 0  ;;  %p36_p10 = scmp.eq.s32.totalorder %s1172_s18, 0 }
  0x40   : > { %p1473_p3 = scmp.eq.s32.totalorder %s1230_s19, 1  ;;  %p972_p7 = scmp.lt.s32.totalorder %s1172_s18, 2 }
  0x41   : > { %s1335_s14 = scalar_select %p26_p6, %s1168_s17, %s28_s26  }
  0x42   : > { %p1329_p5 = por %p1473_p3, %p35_p13  ;;  %p37_p9 = por %p36_p10, %p35_p13 }
  0x43   : > { %s183_s20 = sand.u32 1, %s1168_s17   ;;  %s941_s28 = smul.u32 1536, %s1172_s18 }
  0x44   : > { %s1474_s13 = scalar_select %p1329_p5, 1, 0 }
  0x45   : > { %s940_s24 = smul.u32 96, %s183_s20  ;;  %p1339_p11 = pnand %p972_p7, %p37_p9 }
  0x46   : > { %s1346_s29 = scalar_lea.hbm %s1461_s0, %s941_s28  ;;  %s1350_s6 = scalar_lea.sflag [#allocation3], %s183_s20 }
  0x47   : > { %s187_s30 = scalar_lea.vmem [#allocation2], %s940_s24  ;;  %s1072_s25 = scalar_lea.hbm %s1346_s29, 1536 }
  0x48   : > { %s194_s5 = sshll.u32 %s187_s30, 4  ;;  %p1073_p12 = scmp.ne.s32.totalorder %s1346_s29, %s1072_s25  ;;  %s1348_s5 = int_to_ptr.vmem [resolvable:$true] %s194_s5 }
  0x49   : > { %p1074_p0 = pneg %p1339_p11  ;;  %s1077_s26 = scalar_lea.hbm %s1461_s0, 3072 }
  0x4a   : > { %p1078_p13 = scmp.lt.u32.totalorder %s1346_s29, %s1461_s0  ;;  %p1079_p6 = scmp.lt.u32.totalorder %s1077_s26, %s1072_s25 }
  0x4b   : > { %p1075_p2 = pnand %p1074_p0, %p1073_p12  ;;  %p1081_p3 = scmp.lt.u32.totalorder %s1072_s25, %s1346_s29 }
  0x4c   : > { %p1080_p10 = por %p1079_p6, %p1078_p13 }
  0x4d   : > { %p1076_p1 = pneg %p1075_p2 }
  0x4e   : > { %p1082_p7 = por %p1081_p3, %p1080_p10 }
  0x50   : > { %p1083_p9 = pnand %p1082_p7, %p1076_p1 }
  0x52   : > { %1086 = shalt.err (!%p1083_p9)
}
  0x53   : > { %s1087_s20 = scalar_lea.vmem %s1348_s5, 1536  ;;  %s1178_s24 = smov [#allocation2]  }
  0x54   : > { %p1088_p12 = scmp.ne.s32.totalorder %s1348_s5, %s1087_s20  ;;  %s1092_s12 = sshll.u32 %s1178_s24, 4  ;;  %s1093_s12 = int_to_ptr.vmem [resolvable:$false] %s1092_s12 }
  0x55   : > { %s1094_s27 = scalar_lea.vmem %s1093_s12, 3072  ;;  %p1095_p4 = scmp.lt.s32.totalorder %s1348_s5, %s1093_s12 }
  0x56   : > { %p1090_p2 = pnand %p1088_p12, %p1074_p0  ;;  %p1096_p13 = scmp.lt.s32.totalorder %s1094_s27, %s1087_s20 }
  0x58   : > { %p1091_p5 = pneg %p1090_p2  ;;  %p1097_p6 = por %p1096_p13, %p1095_p4 }
  0x5a   : > { %p1098_p10 = pnand %p1097_p6, %p1091_p5 }
  0x5c   : > { %1101 = shalt.err (!%p1098_p10)
}
  0x5d   : > { %s1179_s30 = smov 768   ;;  %s1180_s25 = smov 48  }
  0x5e   : > { %965 = dma.hbm_to_vmem [thread:$0]  (!%p1339_p11), %s1346_s29, 1536, %s1348_s5, %s1350_s6, %s1179_s30, %s1179_s30, %s1180_s25  }
  0x5f   : > { %206 = sbr.rel (%p1249_p8) target bundleno = 409 (0x199), region = 36  ;;  %s1381_s7 = sand.u32 (!%p1249_p8), 1, %s1164_s16  }
  0x60   : > { %s942_s8 = smul.u32 (!%p1249_p8), 96, %s1381_s7  ;;  %s209_s26 = scalar_lea.sflag (!%p1249_p8), [#allocation3], %s1381_s7 }
  0x61   : > { %p1476_p4 = scmp.ne.s32.totalorder (!%p1249_p8), %s1469_s21, 0 }
  0x62   : > { %s1385_s10 = scalar_lea.vmem (!%p1249_p8), [#allocation2], %s942_s8 }
  0x66   : > { %1147 = dma.done.wait (%p1476_p4), %s209_s26, 1536  }
  0x67   : > { %1149 = vsyncadd (%p1476_p4), %s209_s26, 4294965760  ;;  %p1477_p5 = scmp.eq.s32.totalorder %s1230_s19, 0 }
  0x69   : > { %1151 = dma.done.wait (%p1477_p5), [#allocation6], 12544   ;;  %p1478_p8 = pmov %p1477_p5 }
  0x6a   : > { %v273_v0 = vld [vmem:[#allocation5 + $0x80] sm:$0xff]  ;;  %v274_v1 = vld [vmem:[#allocation5 + $0x88] sm:$0xff]  ;;  %v275_v11 = vld [vmem:[#allocation5 + $0x90] sm:$0xff]  ;;  %s706_s11 = sshll.u32 %s1381_s7, 4  ;;  %s713_s6 = sshll.u32 %s1230_s19, 8 }
  0x6b   : > { %1153 = vsyncadd (%p1478_p8), [#allocation6], 4294954752  ;;  %v305_v2 = vld [vmem:[#allocation5 + $0x180] sm:$0xff]  ;;  %v828_v3 = vpack.c.bf16 %v274_v1, %v273_v0  ;;  %v306_v4 = vld [vmem:[#allocation5 + $0x188] sm:$0xff]  ;;  %s244_s29 = scalar_lea.vmem [#allocation8], %s706_s11  ;;  %s1417_s24 = scalar_lea.hbm %s1465_s4, %s713_s6 }
  0x6c   : > { %v257_v5 = vld [vmem:[#allocation5] sm:$0xff]  ;;  %v258_v6 = vld [vmem:[#allocation5 + $0x8] sm:$0xff]  ;;  %v860_v7 = vpack.c.bf16 %v306_v4, %v305_v2  ;;  %v276_v13 = vld [vmem:[#allocation5 + $0x98] sm:$0xff]  ;;  %s605_s5 = sshll.u32 %s244_s29, 4  ;;  %s592_s12 = scalar_lea.sflag [#allocation4], %s1381_s7  ;;  %s1412_s5 = int_to_ptr.vmem [resolvable:$true] %s605_s5 }
  0x6d   : > { %v830_v8 = vpack.c.bf16 %v258_v6, %v257_v5  ;;  %v289_v9 = vld [vmem:[#allocation5 + $0x100] sm:$0xff]  ;;  %v290_v10 = vld [vmem:[#allocation5 + $0x108] sm:$0xff]  ;;  %829 = vmatprep.subr.bf16.mxu0 %v828_v3  ;;  %v307_v14 = vld [vmem:[#allocation5 + $0x190] sm:$0xff]  ;;  %v832_v16 = vpack.c.bf16 %v276_v13, %v275_v11  ;;  %s1102_s27 = scalar_lea.vmem %s1412_s5, 256  ;;  %p1479_p0 = scmp.ne.s32.totalorder %s1474_s13, 0 }
  0x6e   : > { %v862_v12 = vpack.c.bf16 %v290_v10, %v289_v9  ;;  %v308_v15 = vld [vmem:[#allocation5 + $0x198] sm:$0xff]  ;;  %861 = vmatprep.subr.bf16.mxu1 %v860_v7  ;;  %v259_v18 = vld [vmem:[#allocation5 + $0x10] sm:$0xff]  ;;  %v277_v23 = vld [vmem:[#allocation5 + $0xa0] sm:$0xff]  ;;  %p1103_p11 = scmp.ne.s32.totalorder %s1412_s5, %s1102_s27  ;;  %s1181_s19 = smov [#allocation8]  }
  0x6f   : > { %831 = vmatpush3.bf16.msra.mxu0 %v830_v8  ;;  %v864_v17 = vpack.c.bf16 %v308_v15, %v307_v14  ;;  %v260_v19 = vld [vmem:[#allocation5 + $0x18] sm:$0xff]  ;;  %v291_v20 = vld [vmem:[#allocation5 + $0x110] sm:$0xff]  ;;  %v278_v24 = vld [vmem:[#allocation5 + $0xa8] sm:$0xff]  ;;  %s1106_s30 = sshll.u32 %s1181_s19, 4  ;;  %s1107_s30 = int_to_ptr.vmem [resolvable:$false] %s1106_s30 }
  0x70   : > { %863 = vmatpush3.bf16.msra.mxu1 %v862_v12  ;;  %v834_v21 = vpack.c.bf16 %v260_v19, %v259_v18  ;;  %v292_v22 = vld [vmem:[#allocation5 + $0x118] sm:$0xff]  ;;  %833 = vmatprep.subr.bf16.mxu0 %v832_v16  ;;  %v836_v26 = vpack.c.bf16 %v278_v24, %v277_v23  ;;  %v309_v27 = vld [vmem:[#allocation5 + $0x1a0] sm:$0xff]  ;;  %v310_v28 = vld [vmem:[#allocation5 + $0x1a8] sm:$0xff]  ;;  %p1104_p1 = pnand %p1103_p11, %p1479_p0  ;;  %s1108_s25 = scalar_lea.vmem %s1107_s30, 512 }
  0x71   : > { %865 = vmatprep.subr.bf16.mxu1 %v864_v17  ;;  %v866_v25 = vpack.c.bf16 %v292_v22, %v291_v20  ;;  %v261_v29 = vld [vmem:[#allocation5 + $0x20] sm:$0xff]  ;;  %v868_v30 = vpack.c.bf16 %v310_v28, %v309_v27  ;;  %v262_v31 = vld [vmem:[#allocation5 + $0x28] sm:$0xff]  ;;  %v279_v35 = vld [vmem:[#allocation5 + $0xb0] sm:$0xff]  ;;  %p1109_p7 = scmp.lt.s32.totalorder %s1412_s5, %s1107_s30  ;;  %p1110_p9 = scmp.lt.s32.totalorder %s1108_s25, %s1102_s27 }
  0x72   : > { %v293_v32 = vld [vmem:[#allocation5 + $0x120] sm:$0xff]  ;;  %v294_v33 = vld [vmem:[#allocation5 + $0x128] sm:$0xff]  ;;  %v838_v34 = vpack.c.bf16 %v262_v31, %v261_v29  ;;  %v280_v36 = vld [vmem:[#allocation5 + $0xb8] sm:$0xff]  ;;  %p1105_p3 = pneg %p1104_p1 }
  0x73   : > { %835 = vmatpush3.bf16.msra.mxu0 %v834_v21  ;;  %v311_v37 = vld [vmem:[#allocation5 + $0x1b0] sm:$0xff]  ;;  %v870_v38 = vpack.c.bf16 %v294_v33, %v293_v32  ;;  %v840_v39 = vpack.c.bf16 %v280_v36, %v279_v35  ;;  %v312_v40 = vld [vmem:[#allocation5 + $0x1b8] sm:$0xff]  ;;  %v281_v46 = vld [vmem:[#allocation5 + $0xc0] sm:$0xff]  ;;  %p1111_p12 = por %p1110_p9, %p1109_p7 }
  0x74   : > { %867 = vmatpush3.bf16.msra.mxu1 %v866_v25  ;;  %837 = vmatprep.subr.bf16.mxu0 %v836_v26  ;;  %v263_v41 = vld [vmem:[#allocation5 + $0x30] sm:$0xff]  ;;  %v264_v42 = vld [vmem:[#allocation5 + $0x38] sm:$0xff]  ;;  %v872_v43 = vpack.c.bf16 %v312_v40, %v311_v37  ;;  %v282_v47 = vld [vmem:[#allocation5 + $0xc8] sm:$0xff] }
  0x75   : > { %869 = vmatprep.subr.bf16.mxu1 %v868_v30  ;;  %v295_v44 = vld [vmem:[#allocation5 + $0x130] sm:$0xff]  ;;  %v296_v45 = vld [vmem:[#allocation5 + $0x138] sm:$0xff]  ;;  %v313_v48 = vld [vmem:[#allocation5 + $0x1c0] sm:$0xff]  ;;  %v842_v50 = vpack.c.bf16 %v264_v42, %v263_v41  ;;  %v844_v52 = vpack.c.bf16 %v282_v47, %v281_v46  ;;  %p1112_p2 = pnand %p1111_p12, %p1105_p3 }
  0x76   : > { %v314_v49 = vld [vmem:[#allocation5 + $0x1c8] sm:$0xff]  ;;  %v874_v51 = vpack.c.bf16 %v296_v45, %v295_v44  ;;  %v265_v53 = vld [vmem:[#allocation5 + $0x40] sm:$0xff]  ;;  %v283_v58 = vld [vmem:[#allocation5 + $0xd0] sm:$0xff] }
  0x77   : > { %839 = vmatpush3.bf16.msra.mxu0 %v838_v34  ;;  %v266_v54 = vld [vmem:[#allocation5 + $0x48] sm:$0xff]  ;;  %v297_v55 = vld [vmem:[#allocation5 + $0x140] sm:$0xff]  ;;  %v876_v56 = vpack.c.bf16 %v314_v49, %v313_v48  ;;  %v284_v59 = vld [vmem:[#allocation5 + $0xd8] sm:$0xff] }
  0x78   : > { %871 = vmatpush3.bf16.msra.mxu1 %v870_v38  ;;  %841 = vmatprep.subr.bf16.mxu0 %v840_v39  ;;  %v298_v57 = vld [vmem:[#allocation5 + $0x148] sm:$0xff]  ;;  %v315_v60 = vld [vmem:[#allocation5 + $0x1d0] sm:$0xff]  ;;  %v316_v61 = vld [vmem:[#allocation5 + $0x1d8] sm:$0xff]  ;;  %v846_v62 = vpack.c.bf16 %v266_v54, %v265_v53  ;;  %v848_v0 = vpack.c.bf16 %v284_v59, %v283_v58 }
  0x79   : > { %873 = vmatprep.subr.bf16.mxu1 %v872_v43  ;;  %v878_v63 = vpack.c.bf16 %v298_v57, %v297_v55  ;;  %v267_v1 = vld [vmem:[#allocation5 + $0x50] sm:$0xff]  ;;  %v268_v2 = vld [vmem:[#allocation5 + $0x58] sm:$0xff]  ;;  %v880_v4 = vpack.c.bf16 %v316_v61, %v315_v60  ;;  %v285_v6 = vld [vmem:[#allocation5 + $0xe0] sm:$0xff] }
  0x7a   : > { %v299_v3 = vld [vmem:[#allocation5 + $0x150] sm:$0xff]  ;;  %v300_v5 = vld [vmem:[#allocation5 + $0x158] sm:$0xff]  ;;  %v286_v7 = vld [vmem:[#allocation5 + $0xe8] sm:$0xff]  ;;  %v850_v10 = vpack.c.bf16 %v268_v2, %v267_v1 }
  0x7b   : > { %843 = vmatpush3.bf16.msra.mxu0 %v842_v50  ;;  %v317_v8 = vld [vmem:[#allocation5 + $0x1e0] sm:$0xff]  ;;  %v318_v9 = vld [vmem:[#allocation5 + $0x1e8] sm:$0xff]  ;;  %v882_v13 = vpack.c.bf16 %v300_v5, %v299_v3  ;;  %v852_v14 = vpack.c.bf16 %v286_v7, %v285_v6  ;;  %v248_v17 = vld [vmem:[%s1385_s10 + $0x18] sm:$0xff] }
  0x7c   : > { %875 = vmatpush3.bf16.msra.mxu1 %v874_v51  ;;  %845 = vmatprep.subr.bf16.mxu0 %v844_v52  ;;  %v269_v11 = vld [vmem:[#allocation5 + $0x60] sm:$0xff]  ;;  %v270_v12 = vld [vmem:[#allocation5 + $0x68] sm:$0xff]  ;;  %v884_v18 = vpack.c.bf16 %v318_v9, %v317_v8  ;;  %v287_v20 = vld [vmem:[#allocation5 + $0xf0] sm:$0xff] }
  0x7d   : > { %877 = vmatprep.subr.bf16.mxu1 %v876_v56  ;;  %v301_v15 = vld [vmem:[#allocation5 + $0x160] sm:$0xff]  ;;  %v246_v16 = vld [vmem:[%s1385_s10 + $0x8] sm:$0xff]  ;;  %v288_v21 = vld [vmem:[#allocation5 + $0xf8] sm:$0xff]  ;;  %499 = vmatprep.mubr.f32.mxu1 %v248_v17  ;;  %v854_v24 = vpack.c.bf16 %v270_v12, %v269_v11 }
  0x7e   : > { %v302_v19 = vld [vmem:[#allocation5 + $0x168] sm:$0xff]  ;;  %424 = vmatprep.mubr.f32.mxu0 %v246_v16  ;;  %v319_v22 = vld [vmem:[#allocation5 + $0x1f0] sm:$0xff]  ;;  %v320_v23 = vld [vmem:[#allocation5 + $0x1f8] sm:$0xff]  ;;  %v856_v26 = vpack.c.bf16 %v288_v21, %v287_v20 }
  0x7f   : > { %847 = vmatpush3.bf16.msra.mxu0 %v846_v62  ;;  %v886_v25 = vpack.c.bf16 %v302_v19, %v301_v15  ;;  %v271_v27 = vld [vmem:[#allocation5 + $0x70] sm:$0xff]  ;;  %v272_v28 = vld [vmem:[#allocation5 + $0x78] sm:$0xff]  ;;  %v888_v30 = vpack.c.bf16 %v320_v23, %v319_v22  ;;  %v337_v32 = vld [vmem:[#allocation5 + $0x280] sm:$0xff] }
  0x80   : > { %879 = vmatpush3.bf16.msra.mxu1 %v878_v63  ;;  %849 = vmatprep.subr.bf16.mxu0 %v848_v0  ;;  %v303_v29 = vld [vmem:[#allocation5 + $0x170] sm:$0xff]  ;;  %v304_v31 = vld [vmem:[#allocation5 + $0x178] sm:$0xff]  ;;  %v338_v33 = vld [vmem:[#allocation5 + $0x288] sm:$0xff]  ;;  %v858_v34 = vpack.c.bf16 %v272_v28, %v271_v27 }
  0x81   : > { %881 = vmatprep.subr.bf16.mxu1 %v880_v4  ;;  %v890_v35 = vpack.c.bf16 %v304_v31, %v303_v29  ;;  %v892_v36 = vpack.c.bf16 %v338_v33, %v337_v32  ;;  %v321_v37 = vld [vmem:[#allocation5 + $0x200] sm:$0xff]  ;;  %v322_v38 = vld [vmem:[#allocation5 + $0x208] sm:$0xff]  ;;  %v339_v39 = vld [vmem:[#allocation5 + $0x290] sm:$0xff] }
  0x82   : > { %v340_v40 = vld [vmem:[#allocation5 + $0x298] sm:$0xff]  ;;  %v245_v41 = vld [vmem:[%s1385_s10] sm:$0xff]  ;;  %v894_v42 = vpack.c.bf16 %v322_v38, %v321_v37  ;;  %v247_v43 = vld [vmem:[%s1385_s10 + $0x10] sm:$0xff] }
  0x83   : > { %851 = vmatpush3.bf16.msra.mxu0 %v850_v10  ;;  %v896_v44 = vpack.c.bf16 %v340_v40, %v339_v39  ;;  %v323_v45 = vld [vmem:[#allocation5 + $0x210] sm:$0xff]  ;;  %v324_v46 = vld [vmem:[#allocation5 + $0x218] sm:$0xff]  ;;  %v341_v47 = vld [vmem:[#allocation5 + $0x2a0] sm:$0xff] }
  0x84   : > { %883 = vmatpush3.bf16.msra.mxu1 %v882_v13  ;;  %853 = vmatprep.subr.bf16.mxu0 %v852_v14  ;;  %v342_v48 = vld [vmem:[#allocation5 + $0x2a8] sm:$0xff]  ;;  %v252_v49 = vld [vmem:[%s1385_s10 + $0x38] sm:$0xff]  ;;  %v898_v50 = vpack.c.bf16 %v324_v46, %v323_v45  ;;  %v251_v51 = vld [vmem:[%s1385_s10 + $0x30] sm:$0xff] }
  0x85   : > { %885 = vmatprep.subr.bf16.mxu1 %v884_v18  ;;  %v254_v52 = vld [vmem:[%s1385_s10 + $0x48] sm:$0xff]  ;;  %v900_v53 = vpack.c.bf16 %v342_v48, %v341_v47  ;;  %v325_v54 = vld [vmem:[#allocation5 + $0x220] sm:$0xff]  ;;  %v343_v57 = vld [vmem:[#allocation5 + $0x2b0] sm:$0xff] }
  0x86   : > { %v326_v55 = vld [vmem:[#allocation5 + $0x228] sm:$0xff]  ;;  %v253_v56 = vld [vmem:[%s1385_s10 + $0x40] sm:$0xff]  ;;  %v344_v58 = vld [vmem:[#allocation5 + $0x2b8] sm:$0xff] }
  0x87   : > { %855 = vmatpush3.bf16.msra.mxu0 %v854_v24  ;;  %v250_v59 = vld [vmem:[%s1385_s10 + $0x28] sm:$0xff]  ;;  %v902_v60 = vpack.c.bf16 %v326_v55, %v325_v54  ;;  %v256_v61 = vld [vmem:[%s1385_s10 + $0x58] sm:$0xff]  ;;  %v904_v62 = vpack.c.bf16 %v344_v58, %v343_v57  ;;  %v327_v63 = vld [vmem:[#allocation5 + $0x230] sm:$0xff] }
  0x88   : > { %887 = vmatpush3.bf16.msra.mxu1 %v886_v25  ;;  %857 = vmatprep.subr.bf16.mxu0 %v856_v26  ;;  %v328_v0 = vld [vmem:[#allocation5 + $0x238] sm:$0xff]  ;;  %v345_v1 = vld [vmem:[#allocation5 + $0x2c0] sm:$0xff]  ;;  %v346_v2 = vld [vmem:[#allocation5 + $0x2c8] sm:$0xff] }
  0x89   : > { %889 = vmatprep.subr.bf16.mxu1 %v888_v30  ;;  %v906_v3 = vpack.c.bf16 %v328_v0, %v327_v63  ;;  %v908_v4 = vpack.c.bf16 %v346_v2, %v345_v1  ;;  %v329_v5 = vld [vmem:[#allocation5 + $0x240] sm:$0xff]  ;;  %v330_v6 = vld [vmem:[#allocation5 + $0x248] sm:$0xff]  ;;  %v347_v7 = vld [vmem:[#allocation5 + $0x2d0] sm:$0xff] }
  0x8a   : > { %v348_v8 = vld [vmem:[#allocation5 + $0x2d8] sm:$0xff]  ;;  %v910_v9 = vpack.c.bf16 %v330_v6, %v329_v5  ;;  %v331_v11 = vld [vmem:[#allocation5 + $0x250] sm:$0xff]  ;;  %v349_v13 = vld [vmem:[#allocation5 + $0x2e0] sm:$0xff] }
  0x8b   : > { %859 = vmatpush3.bf16.msra.mxu0 %v858_v34  ;;  %v912_v10 = vpack.c.bf16 %v348_v8, %v347_v7  ;;  %v332_v12 = vld [vmem:[#allocation5 + $0x258] sm:$0xff]  ;;  %v350_v14 = vld [vmem:[#allocation5 + $0x2e8] sm:$0xff]  ;;  %v333_v17 = vld [vmem:[#allocation5 + $0x260] sm:$0xff] }
  0x8c   : > { %891 = vmatpush3.bf16.msra.mxu1 %v890_v35  ;;  %893 = vmatprep.subr.bf16.mxu0 %v892_v36  ;;  %v914_v15 = vpack.c.bf16 %v332_v12, %v331_v11  ;;  %v916_v16 = vpack.c.bf16 %v350_v14, %v349_v13  ;;  %v334_v18 = vld [vmem:[#allocation5 + $0x268] sm:$0xff]  ;;  %v351_v19 = vld [vmem:[#allocation5 + $0x2f0] sm:$0xff]  ;;  %v352_v20 = vld [vmem:[#allocation5 + $0x2f8] sm:$0xff] }
  0x8d   : > { %924 = vmatprep.subr.bf16.mxu1 %v892_v36  ;;  %v918_v21 = vpack.c.bf16 %v334_v18, %v333_v17  ;;  %v920_v22 = vpack.c.bf16 %v352_v20, %v351_v19  ;;  %v335_v23 = vld [vmem:[#allocation5 + $0x270] sm:$0xff]  ;;  %v336_v24 = vld [vmem:[#allocation5 + $0x278] sm:$0xff]  ;;  %v249_v26 = vld [vmem:[%s1385_s10 + $0x20] sm:$0xff] }
  0x8e   : > { %425 = vmatmul.mubr.f32.vlgmr.msra.gmra.mrb[0].mxu0 %v245_v41  ;;  %v922_v25 = vpack.c.bf16 %v336_v24, %v335_v23  ;;  %v255_v27 = vld [vmem:[%s1385_s10 + $0x50] sm:$0xff]  ;;  %v707_v30 = vld [vmem:[%s1463_s2] ss:$0 sm:$0xff] }
  0x8f   : > { %500 = vmatmul.mubr.f32.vlgmr.msra.gmra.mrb[0].mxu1 %v247_v43  ;;  %895 = vmatpush3.bf16.msra.mxu0 %v894_v42 }
  0x90   : > { %932 = vmatpush3.bf16.msra.mxu1 %v894_v42  ;;  %897 = vmatprep.subr.bf16.mxu0 %v896_v44 }
  0x91   : > { %925 = vmatprep.subr.bf16.mxu1 %v896_v44  ;;  %429 = vmatprep.mubr.f32.mxu0 %v252_v49 }
  0x92   : > { %430 = vmatmul.mubr.f32.gmra.mrb[2].mxu0 %v251_v51  ;;  %504 = vmatprep.mubr.f32.mxu1 %v254_v52 }
  0x93   : > { %899 = vmatpush3.bf16.msra.mxu0 %v898_v50  ;;  %505 = vmatmul.mubr.f32.gmra.mrb[2].mxu1 %v253_v56 }
  0x94   : > { %933 = vmatpush3.bf16.msra.mxu1 %v898_v50  ;;  %901 = vmatprep.subr.bf16.mxu0 %v900_v53  ;;  %v585_v50 = vld [vmem:[#allocation7] sm:$0xff] }
  0x95   : > { %926 = vmatprep.subr.bf16.mxu1 %v900_v53  ;;  %574 = vmatprep.mubr.f32.mxu0 %v250_v59  ;;  %v586_v53 = vld [vmem:[#allocation7 + $0x8] sm:$0xff] }
  0x96   : > { %579 = vmatprep.mubr.f32.mxu1 %v256_v61 }
  0x97   : > { %903 = vmatpush3.bf16.msra.mxu0 %v902_v60 }
  0x98   : > { %934 = vmatpush3.bf16.msra.mxu1 %v902_v60  ;;  %905 = vmatprep.subr.bf16.mxu0 %v904_v62 }
  0x99   : > { %927 = vmatprep.subr.bf16.mxu1 %v904_v62 }
  0x9b   : > { %907 = vmatpush3.bf16.msra.mxu0 %v906_v3 }
  0x9c   : > { %935 = vmatpush3.bf16.msra.mxu1 %v906_v3  ;;  %909 = vmatprep.subr.bf16.mxu0 %v908_v4 }
  0x9d   : > { %928 = vmatprep.subr.bf16.mxu1 %v908_v4 }
  0x9f   : > { %911 = vmatpush3.bf16.msra.mxu0 %v910_v9 }
  0xa0   : > { %936 = vmatpush3.bf16.msra.mxu1 %v910_v9  ;;  %913 = vmatprep.subr.bf16.mxu0 %v912_v10 }
  0xa1   : > { %929 = vmatprep.subr.bf16.mxu1 %v912_v10 }
  0xa3   : > { %915 = vmatpush3.bf16.msra.mxu0 %v914_v15 }
  0xa4   : > { %937 = vmatpush3.bf16.msra.mxu1 %v914_v15  ;;  %917 = vmatprep.subr.bf16.mxu0 %v916_v16 }
  0xa5   : > { %930 = vmatprep.subr.bf16.mxu1 %v916_v16 }
  0xa7   : > { %919 = vmatpush3.bf16.msra.mxu0 %v918_v21 }
  0xa8   : > { %938 = vmatpush3.bf16.msra.mxu1 %v918_v21  ;;  %921 = vmatprep.subr.bf16.mxu0 %v920_v22 }
  0xa9   : > { %931 = vmatprep.subr.bf16.mxu1 %v920_v22 }
  0xab   : > { %923 = vmatpush3.bf16.msra.mxu0 %v922_v25 }
  0xac   : > { %939 = vmatpush3.bf16.msra.mxu1 %v922_v25 }
  0xae   : > { %575 = vmatmul.mubr.f32.vlgmr.msra.gmra.mrb[4].mxu0 %v249_v26 }
  0xaf   : > { %580 = vmatmul.mubr.f32.vlgmr.msra.gmra.mrb[4].mxu1 %v255_v27 }
 0x161   : > { %v746_v28 = vpop.f32.mrb[0].mxu0 }
 0x162   : > { %v784_v29 = vpop.f32.mrb[0].mxu1  ;;  %v747_v31 = vpop.f32.mrb[1].mxu0 }
 0x163   : > { %v748_v32 = vadd.f32 %v747_v31, %v746_v28  ;;  %v785_v33 = vpop.f32.mrb[1].mxu1 }
 0x164   : > { %v786_v34 = vadd.f32 %v785_v33, %v784_v29 }
 0x165   : > { %v427_v35 = vadd.f32 %v748_v32, %v707_v30  ;;  %v749_v36 = vpop.f32.mrb[2].mxu0 }
 0x166   : > { %v750_v37 = vpop.f32.mrb[3].mxu0  ;;  %v787_v38 = vpop.f32.mrb[2].mxu1 }
 0x167   : > { %v502_v39 = vadd.f32 %v786_v34, %v427_v35  ;;  %v751_v40 = vadd.f32 %v750_v37, %v749_v36  ;;  %v788_v41 = vpop.f32.mrb[3].mxu1 }
 0x168   : > { %v789_v42 = vadd.f32 %v788_v41, %v787_v38 }
 0x169   : > { %v432_v43 = vadd.f32 %v751_v40, %v707_v30 }
 0x16b   : > { %v507_v44 = vadd.f32 %v789_v42, %v432_v43 }
 0x181   : > { %v822_v45 = vpop.f32.mrb[4].mxu0 }
 0x182   : > { %v825_v46 = vpop.f32.mrb[4].mxu1  ;;  %v823_v47 = vpop.f32.mrb[5].mxu0 }
 0x183   : > { %v824_v48 = vadd.f32 %v823_v47, %v822_v45  ;;  %v826_v49 = vpop.f32.mrb[5].mxu1 }
 0x184   : > { %v827_v51 = vadd.f32 %v826_v49, %v825_v46 }
 0x185   : > { %v577_v52 = vadd.f32 %v824_v48, %v502_v39 }
 0x186   : > { %v582_v54 = vadd.f32 %v827_v51, %v507_v44 }
 0x187   : > { %v587_v55 = vadd.f32 %v585_v50, %v577_v52 }
 0x188   : > { %v588_v56 = vadd.f32 %v586_v53, %v582_v54 }
 0x189   : > { %589 = vst [vmem:[%s244_s29] sm:$0xff] %v587_v55 }
 0x18a   : > { %590 = vst [vmem:[%s244_s29 + $0x8] sm:$0xff] %v588_v56 }
 0x18b   : > { %1115 = shalt.err (!%p1112_p2)
}
 0x18c   : > { %s1116_s8 = scalar_lea.hbm %s1417_s24, 256  ;;  %s1120_s21 = scalar_lea.hbm %s1465_s4, 512 }
 0x18d   : > { %p1117_p13 = scmp.ne.s32.totalorder %s1417_s24, %s1116_s8  ;;  %p1121_p4 = scmp.lt.u32.totalorder %s1417_s24, %s1465_s4 }
 0x18e   : > { %p1122_p5 = scmp.lt.u32.totalorder %s1120_s21, %s1116_s8  ;;  %p1124_p11 = scmp.lt.u32.totalorder %s1116_s8, %s1417_s24 }
 0x18f   : > { %p1118_p6 = pnand %p1117_p13, %p1479_p0 }
 0x190   : > { %p1123_p8 = por %p1122_p5, %p1121_p4 }
 0x191   : > { %p1119_p10 = pneg %p1118_p6 }
 0x192   : > { %p1125_p1 = por %p1124_p11, %p1123_p8 }
 0x194   : > { %p1126_p3 = pnand %p1125_p1, %p1119_p10 }
 0x196   : > { %1129 = shalt.err (!%p1126_p3)
}
 0x197   : > { %s1182_s29 = smov 128   ;;  %s1183_s6 = smov 8  }
 0x198   : > { %953 = dma.vmem_to_hbm [thread:$0]  (%p1479_p0), %s1412_s5, 256, %s1417_s24, %s592_s12, %s1182_s29, %s1182_s29, %s1183_s6  }
 0x199 PF: > { %s620_s28 = sand.u32 1, %s1160_s15   ;;  %p1480_p7 = scmp.ne.s32.totalorder %s1470_s22, 0 }
 0x19a   : > { %p1481_p9 = scmp.ge.s32.totalorder %s1172_s18, 2  ;;  %s621_s20 = scalar_lea.sflag [#allocation4], %s620_s28 }
 0x19c   : > { %p967_p12 = pnand %p1481_p9, %p1480_p7 }
 0x19e   : > { %1155 = dma.done.wait (!%p967_p12), %s621_s20, 256  }
 0x19f   : > { %1157 = vsyncadd (!%p967_p12), %s621_s20, 4294967040  ;;  %p18_p2 = scmp.ge.s32.totalorder %s1319_s9, 4   ;;  %s1482_s15 = smov %s1164_s16 }
 0x1a0   : > { %s1483_s16 = smov %s1168_s17  ;;  %s1484_s17 = smov %s1335_s14 }
 0x1a1   : > { %s1485_s18 = smov %s1319_s9  ;;  %20 = sbr.rel (!%p18_p2) target bundleno = 6 (0x6), region = 89 }
 0x1a8   :  { %626 = vsyncpa [#allocation3], 1 }
 0x1a9   :  { %628 = vsyncpa [#allocation3 + $0x1], 1 }
 0x1aa   :  { %629 = vsyncpa [#allocation6], 1 }
 0x1ab   :  { %630 = vsyncpa [#allocation4], 1 }
 0x1ac   :  { %632 = vsyncpa [#allocation4 + $0x1], 1 }

</bundles_post_ra>
